<compile_context>
chip_gen: v7x
topology: tpu7x:2x2x1
jax: 0.10.0
libtpu: 0.0.40
codegen_flags: <defaults>
</compile_context>

<pallas_src>
import functools

import jax
import jax.numpy as jnp
from jax.experimental import pallas as pl
from jax.experimental.pallas import tpu as pltpu


def _round_up(x, m):
    return (x + m - 1) // m * m


def _vmem_limit_bytes():
    """~3/4 of physical VMEM: 96 MiB on v5e/v6e (128 MiB), 48 MiB on v7x (64 MiB)."""
    cap = 64 << 20
    try:
        info = pltpu.get_tpu_info()
        cap = int(getattr(info, "vmem_capacity_bytes", cap) or cap)
    except Exception:
        pass
    return max(32 << 20, min(cap * 3 // 4, 112 << 20))


def _gemm_bn_kernel(x_ref, w_ref, shift_ref, o_ref, acc_ref):
    """One (TM, TN) output tile; K (innermost, "arbitrary") accumulated in VMEM f32.

    x_ref:     (TM, TK) bf16   im2col patches tile
    w_ref:     (TK, TN) bf16   conv weight with BN scale pre-folded (f32 fold, bf16 cast)
    shift_ref: (1, TN)  f32    BN shift = beta - mean * scale
    o_ref:     (TM, TN) out    output tile
    acc_ref:   (TM, TN) f32    VMEM accumulator scratch
    """
    k = pl.program_id(2)

    @pl.when(k == 0)
    def _():
        acc_ref[...] = jnp.zeros_like(acc_ref)

    acc_ref[...] += jnp.dot(x_ref[...], w_ref[...],
                            preferred_element_type=jnp.float32)

    @pl.when(k == pl.num_programs(2) - 1)
    def _():
        o_ref[...] = (acc_ref[...] + shift_ref[...]).astype(o_ref.dtype)


def _pick_tiles(M, K_pad, Cout_pad, out_bytes, vmem_budget):
    """Tile sizes: lane-dense, MXU-friendly, trace-time checked against VMEM budget."""
    tk_opts = [t for t in (512, 384, 256, 128) if K_pad % t == 0]
    TM = 256 if M >= 256 else _round_up(M, 8)
    TN = 256 if Cout_pad % 256 == 0 else 128
    TK = tk_opts[0]

    def est(tm, tn, tk):
        # double-buffered input/output blocks + f32 accumulator scratch
        return (2 * tm * tk * 2 + 2 * tk * tn * 2 + 2 * tn * 4
                + 2 * tm * tn * out_bytes + tm * tn * 4)

    while est(TM, TN, TK) > vmem_budget * 3 // 4:
        i = tk_opts.index(TK)
        if i + 1 < len(tk_opts):
            TK = tk_opts[i + 1]
        elif TN > 128:
            TN = 128
        elif TM > 8:
            TM = max(8, TM // 2)
        else:
            break
    return TM, TN, TK


def basic_conv2d_pallas(x_nchw, weight, gamma, beta, running_mean, running_var,
                        *, stride=1, padding=0, dilation=1, eps=1e-5,
                        out_dtype=jnp.float32):
    """Forward of BasicConv2d: BN(Conv2d(x)), no ReLU (matches the PyTorch forward).

    x_nchw: (N, Cin, H, W) float32
    weight: (Cout, Cin, KH, KW) float32 (PyTorch conv weight layout)
    """
    sh = sw = int(stride)
    dh = dw = int(dilation)
    ph = pw = int(padding)

    N, Cin, H, W = x_nchw.shape
    Cout, Cin_w, KH, KW = weight.shape
    assert Cin == Cin_w

    OH = (H + 2 * ph - dh * (KH - 1) - 1) // sh + 1
    OW = (W + 2 * pw - dw * (KW - 1) - 1) // sw + 1

    # ---- XLA-side im2col (plain JAX, fuses under jit): taps folded into K --------------
    x_nhwc = jnp.transpose(x_nchw, (0, 2, 3, 1))
    x_sp = jnp.pad(x_nhwc, ((0, 0), (ph, ph), (pw, pw), (0, 0)))
    taps = []
    for kh in range(KH):
        for kw in range(KW):
            h0, w0 = kh * dh, kw * dw
            taps.append(jax.lax.slice(
                x_sp,
                (0, h0, w0, 0),
                (N, h0 + (OH - 1) * sh + 1, w0 + (OW - 1) * sw + 1, Cin),
                (1, sh, sw, 1)))
    patches = taps[0] if len(taps) == 1 else jnp.concatenate(taps, axis=-1)
    # patches: (N, OH, OW, KH*KW*Cin); last dim is tap-major, Cin-minor.

    K_raw = KH * KW * Cin
    K_pad = _round_up(K_raw, 128)
    Cout_pad = _round_up(Cout, 128)
    M = N * OH * OW
    out_bytes = jnp.dtype(out_dtype).itemsize

    TM, TN, TK = _pick_tiles(M, K_pad, Cout_pad, out_bytes, _vmem_limit_bytes())
    M_pad = _round_up(M, TM)

    x2d = patches.reshape(M, K_raw)
    x2d = jnp.pad(x2d, ((0, M_pad - M), (0, K_pad - K_raw))).astype(jnp.bfloat16)

    # ---- fold BN (eval running stats) into the weights, in f32, before bf16 cast -------
    scale = (gamma / jnp.sqrt(running_var + eps)).astype(jnp.float32)
    shift = (beta - running_mean * scale).astype(jnp.float32)
    w2d = jnp.transpose(weight, (2, 3, 1, 0)).reshape(K_raw, Cout).astype(jnp.float32)
    w2d = w2d * scale[None, :]                       # BN scale folded, f32
    w2d = jnp.pad(w2d, ((0, K_pad - K_raw), (0, Cout_pad - Cout))).astype(jnp.bfloat16)
    shift_p = jnp.pad(shift, (0, Cout_pad - Cout)).reshape(1, Cout_pad)

    grid = (M_pad // TM, Cout_pad // TN, K_pad // TK)

    out2d = pl.pallas_call(
        _gemm_bn_kernel,
        out_shape=jax.ShapeDtypeStruct((M_pad, Cout_pad), out_dtype),
        grid_spec=pltpu.PrefetchScalarGridSpec(
            num_scalar_prefetch=0,
            grid=grid,
            in_specs=[
                pl.BlockSpec((TM, TK), lambda i, j, k: (i, k)),
                pl.BlockSpec((TK, TN), lambda i, j, k: (k, j)),
                pl.BlockSpec((1, TN), lambda i, j, k: (0, j)),
            ],
            out_specs=pl.BlockSpec((TM, TN), lambda i, j, k: (i, j)),
            scratch_shapes=[pltpu.VMEM((TM, TN), jnp.float32)],
        ),
        compiler_params=pltpu.CompilerParams(
            dimension_semantics=("parallel", "parallel", "arbitrary"),
            vmem_limit_bytes=_vmem_limit_bytes(),
        ),
    )(x2d, w2d, shift_p)

    # Strip padding, back to PyTorch NCHW convention.  (For stacked layers, pass
    # out_dtype=bf16 and keep the padded NHWC/GEMM layout to skip this HBM round trip.)
    out = out2d[:M, :Cout].reshape(N, OH, OW, Cout)
    return jnp.transpose(out, (0, 3, 1, 2)).astype(out_dtype)


def _reference(x_nchw, weight, gamma, beta, running_mean, running_var,
               *, stride, padding, dilation, eps=1e-5):
    """Pure-JAX reference (lax conv + BN eval) for correctness checking."""
    y = jax.lax.conv_general_dilated(
        x_nchw, weight,
        window_strides=(stride, stride),
        padding=((padding, padding), (padding, padding)),
        rhs_dilation=(dilation, dilation),
        dimension_numbers=("NCHW", "OIHW", "NCHW"),
        precision=jax.lax.Precision.HIGHEST,
    )
    scale = gamma / jnp.sqrt(running_var + eps)
    shift = beta - running_mean * scale
    return y * scale[None, :, None, None] + shift[None, :, None, None]


if __name__ == "__main__":
    # BasicConv2d(in_planes=4, out_planes=8, kernel_size=3, stride=1, padding=1)
    N, Cin, H, W = 2, 4, 16, 16
    Cout, K, stride, padding, dilation = 8, 3, 1, 1, 1

    key = jax.random.PRNGKey(0)
    kx, kw, kg, kb, km, kv = jax.random.split(key, 6)

    x = jax.random.normal(kx, (N, Cin, H, W), dtype=jnp.float32)
    weight = 0.1 * jax.random.normal(kw, (Cout, Cin, K, K), dtype=jnp.float32)
    gamma = 1.0 + 0.1 * jax.random.normal(kg, (Cout,), dtype=jnp.float32)
    beta = 0.1 * jax.random.normal(kb, (Cout,), dtype=jnp.float32)
    running_mean = 0.1 * jax.random.normal(km, (Cout,), dtype=jnp.float32)
    running_var = jnp.abs(jax.random.normal(kv, (Cout,), dtype=jnp.float32)) + 0.5

    fn = functools.partial(
        basic_conv2d_pallas, stride=stride, padding=padding, dilation=dilation
    )
    out = jax.jit(fn)(x, weight, gamma, beta, running_mean, running_var)
    out = jax.block_until_ready(out)

    ref = _reference(x, weight, gamma, beta, running_mean, running_var,
                     stride=stride, padding=padding, dilation=dilation)

    assert out.shape == (N, Cout, H, W), out.shape
    # bf16 MXU operands with f32 accumulation -> tolerance slightly looser than f32.
    err = float(jnp.max(jnp.abs(out - ref)))
    assert jnp.allclose(out, ref, atol=2e-2, rtol=2e-2), err

    print("KERNEL_OK")
</pallas_src>

<mosaic_0001>
module attributes {stable_mosaic.version = 11 : i64} {
  func.func @_gemm_bn_kernel(%arg0: i32, %arg1: i32, %arg2: i32, %arg3: memref<256x128xbf16, #tpu.memory_space<vmem>>, %arg4: memref<128x128xbf16, #tpu.memory_space<vmem>>, %arg5: memref<1x128xf32, #tpu.memory_space<vmem>>, %arg6: memref<256x128xf32, #tpu.memory_space<vmem>>, %arg7: memref<256x128xf32, #tpu.memory_space<vmem>>) attributes {dimension_semantics = [#tpu.dimension_semantics<parallel>, #tpu.dimension_semantics<parallel>, #tpu.dimension_semantics<arbitrary>], iteration_bounds = array<i64: 2, 1, 1>, scalar_prefetch = 0 : i64, scratch_operands = 1 : i64, tpu.core_type = #tpu.core_type<tc>, window_params = [{transform_indices = @transform_0, window_bounds = array<i64: 256, 128>}, {transform_indices = @transform_1, window_bounds = array<i64: 128, 128>}, {transform_indices = @transform_2, window_bounds = array<i64: 1, 128>}, {transform_indices = @transform_3, window_bounds = array<i64: 256, 128>}]} {
    %c0_i32 = arith.constant 0 : i32
    %0 = arith.cmpi eq, %arg2, %c0_i32 : i32
    %1 = arith.extui %0 : i1 to i32
    %c0_i32_0 = arith.constant 0 : i32
    %2 = arith.cmpi ne, %1, %c0_i32_0 : i32
    scf.if %2 {
      %cst_10 = arith.constant 0.000000e+00 : f32
      %12 = vector.broadcast %cst_10 : f32 to vector<256x128xf32>
      %c0_11 = arith.constant 0 : index
      %c0_12 = arith.constant 0 : index
      %13 = vector.load %arg7[%c0_11, %c0_12] : memref<256x128xf32, #tpu.memory_space<vmem>>, vector<256x128xf32>
      tpu.vector_store %arg7[%c0_11, %c0_12], %12 {strides = array<i32>} : memref<256x128xf32, #tpu.memory_space<vmem>>, vector<256x128xf32>,
    } else {
    }
    %c0 = arith.constant 0 : index
    %c0_1 = arith.constant 0 : index
    %3 = vector.load %arg7[%c0, %c0_1] : memref<256x128xf32, #tpu.memory_space<vmem>>, vector<256x128xf32>
    %c0_2 = arith.constant 0 : index
    %c0_3 = arith.constant 0 : index
    %4 = vector.load %arg3[%c0_2, %c0_3] : memref<256x128xbf16, #tpu.memory_space<vmem>>, vector<256x128xbf16>
    %c0_4 = arith.constant 0 : index
    %c0_5 = arith.constant 0 : index
    %5 = vector.load %arg4[%c0_4, %c0_5] : memref<128x128xbf16, #tpu.memory_space<vmem>>, vector<128x128xbf16>
    %cst = arith.constant dense<0.000000e+00> : vector<256x128xf32>
    %6 = tpu.matmul %4, %5, %cst {dimension_numbers = #tpu.dot_dimension_numbers<[1], [0], [0], [1], [0, 0, 1, 1], [], []>} : vector<256x128xbf16>, vector<128x128xbf16>, vector<256x128xf32> -> vector<256x128xf32>
    %7 = arith.addf %3, %6 : vector<256x128xf32>
    %c0_6 = arith.constant 0 : index
    %c0_7 = arith.constant 0 : index
    %8 = vector.load %arg7[%c0_6, %c0_7] : memref<256x128xf32, #tpu.memory_space<vmem>>, vector<256x128xf32>
    tpu.vector_store %arg7[%c0_6, %c0_7], %7 {strides = array<i32>} : memref<256x128xf32, #tpu.memory_space<vmem>>, vector<256x128xf32>,
    %c0_i32_8 = arith.constant 0 : i32
    %9 = arith.cmpi eq, %arg2, %c0_i32_8 : i32
    %10 = arith.extui %9 : i1 to i32
    %c0_i32_9 = arith.constant 0 : i32
    %11 = arith.cmpi ne, %10, %c0_i32_9 : i32
    scf.if %11 {
      %c0_10 = arith.constant 0 : index
      %c0_11 = arith.constant 0 : index
      %12 = vector.load %arg7[%c0_10, %c0_11] : memref<256x128xf32, #tpu.memory_space<vmem>>, vector<256x128xf32>
      %c0_12 = arith.constant 0 : index
      %c0_13 = arith.constant 0 : index
      %13 = vector.load %arg5[%c0_12, %c0_13] : memref<1x128xf32, #tpu.memory_space<vmem>>, vector<1x128xf32>
      %14 = vector.broadcast %13 : vector<1x128xf32> to vector<256x128xf32>
      %15 = arith.addf %12, %14 : vector<256x128xf32>
      %c0_14 = arith.constant 0 : index
      %c0_15 = arith.constant 0 : index
      %16 = vector.load %arg6[%c0_14, %c0_15] : memref<256x128xf32, #tpu.memory_space<vmem>>, vector<256x128xf32>
      tpu.vector_store %arg6[%c0_14, %c0_15], %15 {strides = array<i32>} : memref<256x128xf32, #tpu.memory_space<vmem>>, vector<256x128xf32>,
    } else {
    }
    return
  }
  func.func @transform_0(%arg0: i32, %arg1: i32, %arg2: i32) -> (i32, i32) {
    %c0_i32 = arith.constant 0 : i32
    return %arg0, %arg2 : i32, i32
  }
  func.func @transform_1(%arg0: i32, %arg1: i32, %arg2: i32) -> (i32, i32) {
    %c0_i32 = arith.constant 0 : i32
    return %arg2, %arg1 : i32, i32
  }
  func.func @transform_2(%arg0: i32, %arg1: i32, %arg2: i32) -> (i32, i32) {
    %c0_i32 = arith.constant 0 : i32
    %c0_i32_0 = arith.constant 0 : i32
    return %c0_i32, %arg1 : i32, i32
  }
  func.func @transform_3(%arg0: i32, %arg1: i32, %arg2: i32) -> (i32, i32) {
    %c0_i32 = arith.constant 0 : i32
    return %arg0, %arg1 : i32, i32
  }
}

</mosaic_0001>

<bundles_post_ra>
// kernel: basic_conv2d_pallas.1
= control target key start
LH: loop header
LB: loop body
LE: loop exit
PB: predicated region body
PF: predicated region fallthrough
CT: control target
= control target key end

     0   :  { %s1180_s12 = smov 0   ;;  %s1182_s13 = smov 0   ;;  %s1330_s0 = inlined_call_operand.vmem [shape: bf16[512,128], index: 0, kind: input, shape index: {}]   ;;  %s1331_s1 = inlined_call_operand.vmem [shape: bf16[128,128], index: 1, kind: input, shape index: {}]   ;;  %s1332_s2 = inlined_call_operand.vmem [shape: f32[1,128], index: 2, kind: input, shape index: {}]   ;;  %s1333_s3 = inlined_call_operand.vmem [shape: f32[512,128], index: 3, kind: output, shape index: {}]  }
   0x1   :  { %s1184_s14 = smov 0  }
   0x2 LB: > { %s32_s15 = sadd.s32 1, %s1154_s13  ;;  %p968_p0 = scmp.ge.s32.totalorder %s1158_s14, 1  ;;  %s1158_s14 = sphi %s1184_s14, %s13_s14   ;;  %s1154_s13 = sphi %s1182_s13, %s1335_s13   ;;  %s1150_s12 = sphi %s1180_s12, %s1334_s12  }
   0x3   : > { %p34_p1 = scmp.ge.s32.totalorder %s32_s15, 2  ;;  %p188_p2 = scmp.lt.s32.totalorder %s1158_s14, 3 }
   0x5   : > { %s1337_s15 = smov (%p34_p1, %s32_s15), 0  ;;  %p189_p3 = pnand %p968_p0, %p188_p2 }
   0x6   : > { %v1112_v0 = vld [vmem:[%s1331_s1] sm:$0xff] (!%p189_p3)   ;;  %s969_s18 = sshll.u32 (!%p189_p3), %s1150_s12, 5  ;;  %v1113_v1 = vld [vmem:[%s1331_s1 + $0x8] sm:$0xff] (!%p189_p3)   ;;  %v1114_v2 = vld [vmem:[%s1331_s1 + $0x10] sm:$0xff] (!%p189_p3)  }
   0x7   : > { %192 = sbr.rel (%p189_p3) target bundleno = 281 (0x119), region = 32  ;;  %p230_p4 = scmp.lt.s32.totalorder (!%p189_p3), %s969_s18, 63  ;;  %1024 = vmatprep.subr.bf16.mxu0 (!%p189_p3), %v1112_v0  ;;  %1072 = vmatprep.subr.bf16.mxu1 (!%p189_p3), %v1112_v0  ;;  %v1115_v3 = vld [vmem:[%s1331_s1 + $0x18] sm:$0xff] (!%p189_p3)   ;;  %v1116_v6 = vld [vmem:[%s1331_s1 + $0x20] sm:$0xff] (!%p189_p3)   ;;  %v1117_v7 = vld [vmem:[%s1331_s1 + $0x28] sm:$0xff] (!%p189_p3)  }
   0x8   : > { %1025 = vmatpush3.bf16.msra.mxu0 (!%p189_p3), %v1112_v0  ;;  %1080 = vmatpush3.bf16.msra.mxu1 (!%p189_p3), %v1112_v0  ;;  %v1118_v8 = vld [vmem:[%s1331_s1 + $0x30] sm:$0xff] (!%p189_p3)   ;;  %v1119_v9 = vld [vmem:[%s1331_s1 + $0x38] sm:$0xff] (!%p189_p3)   ;;  %v1250_v24 = vld [vmem:[%s1332_s2] ss:$0 sm:$0xff] (!%p189_p3) }
   0x9   : > { %1026 = vmatprep.subr.bf16.mxu0 (!%p189_p3), %v1113_v1  ;;  %1073 = vmatprep.subr.bf16.mxu1 (!%p189_p3), %v1113_v1 }
   0xc   : > { %1027 = vmatpush3.bf16.msra.mxu0 (!%p189_p3), %v1113_v1  ;;  %1081 = vmatpush3.bf16.msra.mxu1 (!%p189_p3), %v1113_v1 }
   0xd   : > { %1028 = vmatprep.subr.bf16.mxu0 (!%p189_p3), %v1114_v2  ;;  %1074 = vmatprep.subr.bf16.mxu1 (!%p189_p3), %v1114_v2 }
   0xe   : > { %s1339_s18 = smov (!%p230_p4, %s969_s18), 63 }
   0xf   : > { %s970_s23 = sshll.u32 %s1339_s18, 2  ;;  %s972_s10 = sshll.u32 %s1339_s18, 3 }
  0x10   : > { %s1213_s26 = scalar_lea.vmem %s1330_s0, %s970_s23  ;;  %1029 = vmatpush3.bf16.msra.mxu0 %v1114_v2  ;;  %1082 = vmatpush3.bf16.msra.mxu1 %v1114_v2  ;;  %s1255_s19 = scalar_lea.vmem %s1333_s3, %s972_s10 }
  0x11   : > { %v1120_v4 = vld [vmem:[%s1213_s26] sm:$0xff]   ;;  %1030 = vmatprep.subr.bf16.mxu0 %v1115_v3  ;;  %1075 = vmatprep.subr.bf16.mxu1 %v1115_v3  ;;  %v1122_v10 = vld [vmem:[%s1213_s26 + $0x8] sm:$0xff]   ;;  %v1124_v12 = vld [vmem:[%s1213_s26 + $0x10] sm:$0xff]  }
  0x12   : > { %v1121_v5 = vld [vmem:[%s1213_s26 + $0x40] sm:$0xff]   ;;  %1040 = vmatprep.mubr.bf16.mxu0 %v1120_v4  ;;  %v1123_v11 = vld [vmem:[%s1213_s26 + $0x48] sm:$0xff]   ;;  %v1125_v13 = vld [vmem:[%s1213_s26 + $0x50] sm:$0xff]  }
  0x13   : > { %1056 = vmatprep.mubr.bf16.mxu1 %v1121_v5  ;;  %v1126_v14 = vld [vmem:[%s1213_s26 + $0x18] sm:$0xff]   ;;  %v1128_v16 = vld [vmem:[%s1213_s26 + $0x20] sm:$0xff]   ;;  %v1130_v18 = vld [vmem:[%s1213_s26 + $0x28] sm:$0xff]  }
  0x14   : > { %1031 = vmatpush3.bf16.msra.mxu0 %v1115_v3  ;;  %1083 = vmatpush3.bf16.msra.mxu1 %v1115_v3  ;;  %v1127_v15 = vld [vmem:[%s1213_s26 + $0x58] sm:$0xff]   ;;  %v1129_v17 = vld [vmem:[%s1213_s26 + $0x60] sm:$0xff]   ;;  %v1131_v19 = vld [vmem:[%s1213_s26 + $0x68] sm:$0xff]  }
  0x15   : > { %1032 = vmatprep.subr.bf16.mxu0 %v1116_v6  ;;  %1076 = vmatprep.subr.bf16.mxu1 %v1116_v6  ;;  %v1132_v20 = vld [vmem:[%s1213_s26 + $0x30] sm:$0xff]   ;;  %v1134_v22 = vld [vmem:[%s1213_s26 + $0x38] sm:$0xff]  }
  0x16   : > { %v1133_v21 = vld [vmem:[%s1213_s26 + $0x70] sm:$0xff]   ;;  %v1135_v23 = vld [vmem:[%s1213_s26 + $0x78] sm:$0xff]  }
  0x18   : > { %1033 = vmatpush3.bf16.msra.mxu0 %v1116_v6  ;;  %1084 = vmatpush3.bf16.msra.mxu1 %v1116_v6 }
  0x19   : > { %1034 = vmatprep.subr.bf16.mxu0 %v1117_v7  ;;  %1077 = vmatprep.subr.bf16.mxu1 %v1117_v7 }
  0x1c   : > { %1035 = vmatpush3.bf16.msra.mxu0 %v1117_v7  ;;  %1085 = vmatpush3.bf16.msra.mxu1 %v1117_v7 }
  0x1d   : > { %1036 = vmatprep.subr.bf16.mxu0 %v1118_v8  ;;  %1078 = vmatprep.subr.bf16.mxu1 %v1118_v8 }
  0x20   : > { %1037 = vmatpush3.bf16.msra.mxu0 %v1118_v8  ;;  %1086 = vmatpush3.bf16.msra.mxu1 %v1118_v8 }
  0x21   : > { %1038 = vmatprep.subr.bf16.mxu0 %v1119_v9  ;;  %1079 = vmatprep.subr.bf16.mxu1 %v1119_v9 }
  0x24   : > { %1039 = vmatpush3.bf16.msra.mxu0 %v1119_v9  ;;  %1087 = vmatpush3.bf16.msra.mxu1 %v1119_v9 }
  0x27   : > { %1041 = vmatmul.mubr.bf16.vlgmr.msra.gmra.mrb[0].mxu0 %v1122_v10  ;;  %1057 = vmatmul.mubr.bf16.vlgmr.msra.gmra.mrb[0].mxu1 %v1123_v11 }
  0x28   : > { %1044 = vmatprep.mubr.bf16.mxu0 %v1124_v12  ;;  %1060 = vmatprep.mubr.bf16.mxu1 %v1125_v13 }
  0x2f   : > { %1045 = vmatmul.mubr.bf16.gmra.mrb[4].mxu0 %v1126_v14  ;;  %1061 = vmatmul.mubr.bf16.gmra.mrb[4].mxu1 %v1127_v15 }
  0x30   : > { %1048 = vmatprep.mubr.bf16.mxu0 %v1128_v16  ;;  %1064 = vmatprep.mubr.bf16.mxu1 %v1129_v17 }
  0x37   : > { %1049 = vmatmul.mubr.bf16.gmra.mrb[8].mxu0 %v1130_v18  ;;  %1065 = vmatmul.mubr.bf16.gmra.mrb[8].mxu1 %v1131_v19 }
  0x38   : > { %1052 = vmatprep.mubr.bf16.mxu0 %v1132_v20  ;;  %1068 = vmatprep.mubr.bf16.mxu1 %v1133_v21 }
  0x3f   : > { %1053 = vmatmul.mubr.bf16.gmra.mrb[12].mxu0 %v1134_v22  ;;  %1069 = vmatmul.mubr.bf16.gmra.mrb[12].mxu1 %v1135_v23 }
  0xfa   : > { %v1042_v25 = vpop.f32.mrb[0].mxu0  ;;  %v1058_v26 = vpop.f32.mrb[0].mxu1 }
  0xfb   : > { %v789_v27 = vadd.f32 %v1042_v25, %v1250_v24  ;;  %v805_v28 = vadd.f32 %v1058_v26, %v1250_v24  ;;  %v554_v29 = vpop.f32.mrb[1].mxu0  ;;  %v618_v30 = vpop.f32.mrb[1].mxu1 }
  0xfc   : > { %v787_v31 = vadd.f32 %v1250_v24, %v554_v29  ;;  %v803_v32 = vadd.f32 %v1250_v24, %v618_v30  ;;  %v1043_v33 = vpop.f32.mrb[2].mxu0  ;;  %v1059_v34 = vpop.f32.mrb[2].mxu1 }
  0xfd   : > { %821 = vst [vmem:[%s1255_s19 + $0x10] sm:$0xff] %v789_v27  ;;  %837 = vst [vmem:[%s1255_s19 + $0x90] sm:$0xff] %v805_v28  ;;  %v790_v35 = vadd.f32 %v1043_v33, %v1250_v24  ;;  %v806_v36 = vadd.f32 %v1059_v34, %v1250_v24  ;;  %v557_v37 = vpop.f32.mrb[3].mxu0  ;;  %v621_v38 = vpop.f32.mrb[3].mxu1 }
  0xfe   : > { %819 = vst [vmem:[%s1255_s19] sm:$0xff] %v787_v31  ;;  %835 = vst [vmem:[%s1255_s19 + $0x80] sm:$0xff] %v803_v32  ;;  %v788_v39 = vadd.f32 %v1250_v24, %v557_v37  ;;  %v804_v40 = vadd.f32 %v1250_v24, %v621_v38 }
  0xff   : > { %822 = vst [vmem:[%s1255_s19 + $0x18] sm:$0xff] %v790_v35  ;;  %838 = vst [vmem:[%s1255_s19 + $0x98] sm:$0xff] %v806_v36 }
 0x100   : > { %820 = vst [vmem:[%s1255_s19 + $0x8] sm:$0xff] %v788_v39  ;;  %836 = vst [vmem:[%s1255_s19 + $0x88] sm:$0xff] %v804_v40 }
 0x102   : > { %v1046_v41 = vpop.f32.mrb[4].mxu0  ;;  %v1062_v42 = vpop.f32.mrb[4].mxu1 }
 0x103   : > { %v793_v43 = vadd.f32 %v1046_v41, %v1250_v24  ;;  %v809_v44 = vadd.f32 %v1062_v42, %v1250_v24  ;;  %v570_v45 = vpop.f32.mrb[5].mxu0  ;;  %v634_v46 = vpop.f32.mrb[5].mxu1 }
 0x104   : > { %v791_v47 = vadd.f32 %v1250_v24, %v570_v45  ;;  %v807_v48 = vadd.f32 %v1250_v24, %v634_v46  ;;  %v1047_v49 = vpop.f32.mrb[6].mxu0  ;;  %v1063_v50 = vpop.f32.mrb[6].mxu1 }
 0x105   : > { %825 = vst [vmem:[%s1255_s19 + $0x30] sm:$0xff] %v793_v43  ;;  %841 = vst [vmem:[%s1255_s19 + $0xb0] sm:$0xff] %v809_v44  ;;  %v794_v51 = vadd.f32 %v1047_v49, %v1250_v24  ;;  %v810_v52 = vadd.f32 %v1063_v50, %v1250_v24  ;;  %v573_v53 = vpop.f32.mrb[7].mxu0  ;;  %v637_v54 = vpop.f32.mrb[7].mxu1 }
 0x106   : > { %823 = vst [vmem:[%s1255_s19 + $0x20] sm:$0xff] %v791_v47  ;;  %839 = vst [vmem:[%s1255_s19 + $0xa0] sm:$0xff] %v807_v48  ;;  %v792_v55 = vadd.f32 %v1250_v24, %v573_v53  ;;  %v808_v56 = vadd.f32 %v1250_v24, %v637_v54 }
 0x107   : > { %826 = vst [vmem:[%s1255_s19 + $0x38] sm:$0xff] %v794_v51  ;;  %842 = vst [vmem:[%s1255_s19 + $0xb8] sm:$0xff] %v810_v52 }
 0x108   : > { %824 = vst [vmem:[%s1255_s19 + $0x28] sm:$0xff] %v792_v55  ;;  %840 = vst [vmem:[%s1255_s19 + $0xa8] sm:$0xff] %v808_v56 }
 0x10a   : > { %v1050_v57 = vpop.f32.mrb[8].mxu0  ;;  %v1066_v58 = vpop.f32.mrb[8].mxu1 }
 0x10b   : > { %v797_v59 = vadd.f32 %v1050_v57, %v1250_v24  ;;  %v813_v60 = vadd.f32 %v1066_v58, %v1250_v24  ;;  %v586_v61 = vpop.f32.mrb[9].mxu0  ;;  %v650_v62 = vpop.f32.mrb[9].mxu1 }
 0x10c   : > { %v795_v63 = vadd.f32 %v1250_v24, %v586_v61  ;;  %v811_v0 = vadd.f32 %v1250_v24, %v650_v62  ;;  %v1051_v1 = vpop.f32.mrb[10].mxu0  ;;  %v1067_v2 = vpop.f32.mrb[10].mxu1 }
 0x10d   : > { %829 = vst [vmem:[%s1255_s19 + $0x50] sm:$0xff] %v797_v59  ;;  %845 = vst [vmem:[%s1255_s19 + $0xd0] sm:$0xff] %v813_v60  ;;  %v798_v3 = vadd.f32 %v1051_v1, %v1250_v24  ;;  %v814_v4 = vadd.f32 %v1067_v2, %v1250_v24  ;;  %v589_v5 = vpop.f32.mrb[11].mxu0  ;;  %v653_v6 = vpop.f32.mrb[11].mxu1 }
 0x10e   : > { %827 = vst [vmem:[%s1255_s19 + $0x40] sm:$0xff] %v795_v63  ;;  %843 = vst [vmem:[%s1255_s19 + $0xc0] sm:$0xff] %v811_v0  ;;  %v796_v7 = vadd.f32 %v1250_v24, %v589_v5  ;;  %v812_v8 = vadd.f32 %v1250_v24, %v653_v6 }
 0x10f   : > { %830 = vst [vmem:[%s1255_s19 + $0x58] sm:$0xff] %v798_v3  ;;  %846 = vst [vmem:[%s1255_s19 + $0xd8] sm:$0xff] %v814_v4 }
 0x110   : > { %828 = vst [vmem:[%s1255_s19 + $0x48] sm:$0xff] %v796_v7  ;;  %844 = vst [vmem:[%s1255_s19 + $0xc8] sm:$0xff] %v812_v8 }
 0x112   : > { %v1054_v9 = vpop.f32.mrb[12].mxu0  ;;  %v1070_v10 = vpop.f32.mrb[12].mxu1 }
 0x113   : > { %v801_v11 = vadd.f32 %v1054_v9, %v1250_v24  ;;  %v817_v12 = vadd.f32 %v1070_v10, %v1250_v24  ;;  %v602_v13 = vpop.f32.mrb[13].mxu0  ;;  %v666_v14 = vpop.f32.mrb[13].mxu1 }
 0x114   : > { %v799_v15 = vadd.f32 %v1250_v24, %v602_v13  ;;  %v815_v16 = vadd.f32 %v1250_v24, %v666_v14  ;;  %v1055_v17 = vpop.f32.mrb[14].mxu0  ;;  %v1071_v18 = vpop.f32.mrb[14].mxu1 }
 0x115   : > { %833 = vst [vmem:[%s1255_s19 + $0x70] sm:$0xff] %v801_v11  ;;  %849 = vst [vmem:[%s1255_s19 + $0xf0] sm:$0xff] %v817_v12  ;;  %v802_v19 = vadd.f32 %v1055_v17, %v1250_v24  ;;  %v818_v20 = vadd.f32 %v1071_v18, %v1250_v24  ;;  %v605_v21 = vpop.f32.mrb[15].mxu0  ;;  %v669_v22 = vpop.f32.mrb[15].mxu1 }
 0x116   : > { %831 = vst [vmem:[%s1255_s19 + $0x60] sm:$0xff] %v799_v15  ;;  %847 = vst [vmem:[%s1255_s19 + $0xe0] sm:$0xff] %v815_v16  ;;  %v800_v23 = vadd.f32 %v1250_v24, %v605_v21  ;;  %v816_v25 = vadd.f32 %v1250_v24, %v669_v22 }
 0x117   : > { %834 = vst [vmem:[%s1255_s19 + $0x78] sm:$0xff] %v802_v19  ;;  %850 = vst [vmem:[%s1255_s19 + $0xf8] sm:$0xff] %v818_v20 }
 0x118   : > { %832 = vst [vmem:[%s1255_s19 + $0x68] sm:$0xff] %v800_v23  ;;  %848 = vst [vmem:[%s1255_s19 + $0xe8] sm:$0xff] %v816_v25 }
 0x119 PF: > { %s13_s14 = sadd.s32 1, %s1158_s14   ;;  %s1334_s12 = smov %s1154_s13 }
 0x11a   : > { %p10_p5 = scmp.ge.s32.totalorder %s13_s14, 4   ;;  %s1335_s13 = smov %s1337_s15 }
 0x11c   :  { %12 = sbr.rel (!%p10_p5) target bundleno = 2 (0x2), region = 76 }

</bundles_post_ra>
